<compile_context>
chip_gen: v5e
topology: v5e:2x2
jax: 0.10.0
libtpu: 0.0.40
codegen_flags: <defaults>
</compile_context>

<pallas_src>
import functools
import math

import jax
import jax.numpy as jnp
from jax.experimental import pallas as pl
from jax.experimental.pallas import tpu as pltpu

_BN_EPS = 1e-5


def _make_encoder_kernel(n_total, N, L, cmax):
    """Build the fused whole-stack kernel for a fixed (n_total, N, L, cmax)."""
    inv_nl = 1.0 / float(N * L)

    def kernel(x_ref, *rest):
        # rest = [w0, g0, b0, ..., w_{n-1}, g_{n-1}, b_{n-1}, o_ref, buf_a, buf_b]
        o_ref = rest[3 * n_total]
        buf_a = rest[3 * n_total + 1]
        buf_b = rest[3 * n_total + 2]

        # Zero only the conv padding halo rows (rows 0 and L+1). They are never
        # written again and serve every layer; interior rows are always fully
        # overwritten before being read.
        halo = jnp.zeros((N, 1, cmax), jnp.float32)
        buf_a[:, 0:1, :] = halo
        buf_a[:, L + 1:L + 2, :] = halo
        buf_b[:, 0:1, :] = halo
        buf_b[:, L + 1:L + 2, :] = halo
        buf_a[:, 1:L + 1, :] = x_ref[...]    # interior = channel-padded input

        bufs = (buf_a, buf_b)
        for li in range(n_total):            # unrolled; activations stay in VMEM
            w_ref = rest[3 * li]             # (3*cmax, cmax) bf16
            g_ref = rest[3 * li + 1]         # (1, cmax)      f32 gamma
            b_ref = rest[3 * li + 2]         # (1, cmax)      f32 beta
            src = bufs[li % 2]
            dst = bufs[(li + 1) % 2]

            # Conv1d(k=3, s=1, p=1): three static shifted ref-slices concatenated
            # along the lane axis -> ONE MXU matmul with contraction depth 3*cmax.
            xcat = jnp.concatenate(
                [src[:, 0:L, :], src[:, 1:L + 1, :], src[:, 2:L + 2, :]],
                axis=-1,
            ).reshape(N * L, 3 * cmax)
            y = jnp.dot(xcat.astype(jnp.bfloat16), w_ref[...],
                        preferred_element_type=jnp.float32)   # (N*L, cmax) f32
            # Conv bias intentionally omitted: a per-channel constant cancels
            # exactly under the BatchNorm mean subtraction below.

            # BatchNorm1d (training mode, biased variance), single-pass stats,
            # affine folded into one per-channel scale/shift.
            mean = jnp.sum(y, axis=0, keepdims=True) * inv_nl
            ex2 = jnp.sum(y * y, axis=0, keepdims=True) * inv_nl
            var = jnp.maximum(ex2 - mean * mean, 0.0)
            scale = g_ref[...] * jax.lax.rsqrt(var + _BN_EPS)   # gamma / sqrt(var+eps)
            shift = b_ref[...] - mean * scale                   # beta - mean*scale
            z = jnp.maximum(y * scale + shift, 0.0)             # BN + ReLU

            if li == n_total - 1:
                o_ref[...] = z               # lane-dense (N*L, cmax) store
            else:
                dst[:, 1:L + 1, :] = z.reshape(N, L, cmax)

    return kernel


@functools.partial(jax.jit, static_argnums=(2, 3))
def encoder_forward(x_ncl, flat_params, cmax, cout_final):
    """x_ncl: (N, 1, L) PyTorch NCL layout -> (N, cout_final, L) NCL."""
    N, cin0, L = x_ncl.shape
    n_total = len(flat_params) // 3

    x = jnp.transpose(x_ncl, (0, 2, 1))                     # NCL -> NLC
    x = jnp.pad(x, ((0, 0), (0, 0), (0, cmax - cin0)))      # channel pad to lane width

    kernel = _make_encoder_kernel(n_total, N, L, cmax)
    out2d = pl.pallas_call(
        kernel,
        out_shape=jax.ShapeDtypeStruct((N * L, cmax), jnp.float32),
        # Ping-pong VMEM activation buffers (length padded by 1 on each side).
        scratch_shapes=[
            pltpu.VMEM((N, L + 2, cmax), jnp.float32),
            pltpu.VMEM((N, L + 2, cmax), jnp.float32),
        ],
    )(x, *flat_params)

    out = out2d.reshape(N, L, cmax)[:, :, :cout_final]
    return jnp.transpose(out, (0, 2, 1))                    # NLC -> NCL


def init_layer_params(key, in_channels, out_channels, kernel_size=3):
    """Deterministic init mirroring PyTorch Conv1d/BatchNorm1d parameters."""
    kw, kb = jax.random.split(key)
    fan_in = in_channels * kernel_size
    bound = 1.0 / math.sqrt(fan_in)
    w = jax.random.uniform(kw, (out_channels, in_channels, kernel_size),
                           jnp.float32, -bound, bound)       # PyTorch (Cout, Cin, K)
    b = jax.random.uniform(kb, (out_channels,), jnp.float32, -bound, bound)
    gamma = jnp.ones((out_channels,), jnp.float32)            # BN default init
    beta = jnp.zeros((out_channels,), jnp.float32)
    return dict(w=w, b=b, gamma=gamma, beta=beta,
                cin=in_channels, cout=out_channels)


def build_encoder_params(key, n_layers):
    """Encoder: DownLayer(1,16), DownLayer(16*2^i, 16*2^(i+1)) ..., MidLayer(C, C)."""
    params = []
    keys = jax.random.split(key, n_layers + 1)
    params.append(init_layer_params(keys[0], 1, 16))
    for i in range(n_layers - 1):
        params.append(init_layer_params(keys[i + 1], 16 * 2 ** i, 16 * 2 ** (i + 1)))
    mid_c = 16 * 2 ** (n_layers - 1)
    params.append(init_layer_params(keys[n_layers], mid_c, mid_c))  # MidLayer
    return params


def pack_encoder_params(params):
    """Zero-pad channels to a multiple of 128 lanes and repack conv weights.

    Conv weight (Cout, Cin, 3) -> (3*cmax, cmax) bf16 with the tap-k block at
    rows [k*cmax, k*cmax+Cin), matching the in-kernel 3-tap lane concatenation.
    The conv bias is dropped (exactly cancelled by the BN mean subtraction).
    """
    max_c = max(max(p["cin"], p["cout"]) for p in params)
    cmax = ((max_c + 127) // 128) * 128
    flat = []
    for p in params:
        cin, cout = p["cin"], p["cout"]
        w_kcico = jnp.transpose(p["w"], (2, 1, 0))            # (3, Cin, Cout)
        w_pad = jnp.zeros((3, cmax, cmax), jnp.float32)
        w_pad = w_pad.at[:, :cin, :cout].set(w_kcico)
        w_pad = w_pad.reshape(3 * cmax, cmax).astype(jnp.bfloat16)
        g_pad = jnp.zeros((1, cmax), jnp.float32).at[0, :cout].set(p["gamma"])
        b_pad = jnp.zeros((1, cmax), jnp.float32).at[0, :cout].set(p["beta"])
        flat += [w_pad, g_pad, b_pad]
    return tuple(flat), int(cmax), int(params[-1]["cout"])


if __name__ == "__main__":
    n_layers = 2          # down: 1->16, 16->32 ; mid: 32->32
    N, L = 2, 16

    key = jax.random.PRNGKey(0)
    kx, kp = jax.random.split(key)
    x = jax.random.normal(kx, (N, 1, L), jnp.float32)  # PyTorch NCL input

    params = build_encoder_params(kp, n_layers)
    flat_params, cmax, cout_final = pack_encoder_params(params)

    out = encoder_forward(x, flat_params, cmax, cout_final)
    out = jax.block_until_ready(out)
    assert out.shape == (N, cout_final, L), out.shape
    assert bool(jnp.all(jnp.isfinite(out)))
    print("KERNEL_OK")
</pallas_src>

<mosaic_0001>
module attributes {stable_mosaic.version = 11 : i64} {
  func.func @kernel(%arg0: memref<2x16x128xf32, #tpu.memory_space<vmem>>, %arg1: memref<384x128xbf16, #tpu.memory_space<vmem>>, %arg2: memref<1x128xf32, #tpu.memory_space<vmem>>, %arg3: memref<1x128xf32, #tpu.memory_space<vmem>>, %arg4: memref<384x128xbf16, #tpu.memory_space<vmem>>, %arg5: memref<1x128xf32, #tpu.memory_space<vmem>>, %arg6: memref<1x128xf32, #tpu.memory_space<vmem>>, %arg7: memref<384x128xbf16, #tpu.memory_space<vmem>>, %arg8: memref<1x128xf32, #tpu.memory_space<vmem>>, %arg9: memref<1x128xf32, #tpu.memory_space<vmem>>, %arg10: memref<32x128xf32, #tpu.memory_space<vmem>>, %arg11: memref<2x18x128xf32, #tpu.memory_space<vmem>>, %arg12: memref<2x18x128xf32, #tpu.memory_space<vmem>>) attributes {dimension_semantics = [], scalar_prefetch = 0 : i64, scratch_operands = 2 : i64, tpu.core_type = #tpu.core_type<tc>} {
    %cst = arith.constant 0.000000e+00 : f32
    %0 = vector.broadcast %cst : f32 to vector<2x1x128xf32>
    %c0 = arith.constant 0 : index
    %c0_0 = arith.constant 0 : index
    %c0_1 = arith.constant 0 : index
    %1 = vector.load %arg11[%c0, %c0_0, %c0_1] : memref<2x18x128xf32, #tpu.memory_space<vmem>>, vector<2x1x128xf32>
    tpu.vector_store %arg11[%c0, %c0_0, %c0_1], %0 {strides = array<i32>} : memref<2x18x128xf32, #tpu.memory_space<vmem>>, vector<2x1x128xf32>,
    %c0_2 = arith.constant 0 : index
    %c17 = arith.constant 17 : index
    %c0_3 = arith.constant 0 : index
    %2 = vector.load %arg11[%c0_2, %c17, %c0_3] : memref<2x18x128xf32, #tpu.memory_space<vmem>>, vector<2x1x128xf32>
    tpu.vector_store %arg11[%c0_2, %c17, %c0_3], %0 {strides = array<i32>} : memref<2x18x128xf32, #tpu.memory_space<vmem>>, vector<2x1x128xf32>,
    %c0_4 = arith.constant 0 : index
    %c0_5 = arith.constant 0 : index
    %c0_6 = arith.constant 0 : index
    %3 = vector.load %arg12[%c0_4, %c0_5, %c0_6] : memref<2x18x128xf32, #tpu.memory_space<vmem>>, vector<2x1x128xf32>
    tpu.vector_store %arg12[%c0_4, %c0_5, %c0_6], %0 {strides = array<i32>} : memref<2x18x128xf32, #tpu.memory_space<vmem>>, vector<2x1x128xf32>,
    %c0_7 = arith.constant 0 : index
    %c17_8 = arith.constant 17 : index
    %c0_9 = arith.constant 0 : index
    %4 = vector.load %arg12[%c0_7, %c17_8, %c0_9] : memref<2x18x128xf32, #tpu.memory_space<vmem>>, vector<2x1x128xf32>
    tpu.vector_store %arg12[%c0_7, %c17_8, %c0_9], %0 {strides = array<i32>} : memref<2x18x128xf32, #tpu.memory_space<vmem>>, vector<2x1x128xf32>,
    %c0_10 = arith.constant 0 : index
    %c0_11 = arith.constant 0 : index
    %c0_12 = arith.constant 0 : index
    %5 = vector.load %arg0[%c0_10, %c0_11, %c0_12] : memref<2x16x128xf32, #tpu.memory_space<vmem>>, vector<2x16x128xf32>
    %c0_13 = arith.constant 0 : index
    %c1 = arith.constant 1 : index
    %c0_14 = arith.constant 0 : index
    %6 = vector.load %arg11[%c0_13, %c1, %c0_14] : memref<2x18x128xf32, #tpu.memory_space<vmem>>, vector<2x16x128xf32>
    tpu.vector_store %arg11[%c0_13, %c1, %c0_14], %5 {strides = array<i32>} : memref<2x18x128xf32, #tpu.memory_space<vmem>>, vector<2x16x128xf32>,
    %c0_15 = arith.constant 0 : index
    %c0_16 = arith.constant 0 : index
    %c0_17 = arith.constant 0 : index
    %7 = vector.load %arg11[%c0_15, %c0_16, %c0_17] : memref<2x18x128xf32, #tpu.memory_space<vmem>>, vector<2x16x128xf32>
    %c0_18 = arith.constant 0 : index
    %c1_19 = arith.constant 1 : index
    %c0_20 = arith.constant 0 : index
    %8 = vector.load %arg11[%c0_18, %c1_19, %c0_20] : memref<2x18x128xf32, #tpu.memory_space<vmem>>, vector<2x16x128xf32>
    %c0_21 = arith.constant 0 : index
    %c2 = arith.constant 2 : index
    %c0_22 = arith.constant 0 : index
    %9 = vector.load %arg11[%c0_21, %c2, %c0_22] : memref<2x18x128xf32, #tpu.memory_space<vmem>>, vector<2x16x128xf32>
    %10 = tpu.concatenate %7, %8, %9 in 2 : vector<2x16x128xf32>, vector<2x16x128xf32>, vector<2x16x128xf32> -> vector<2x16x384xf32>
    %11 = vector.shape_cast %10 : vector<2x16x384xf32> to vector<32x384xf32>
    %12 = arith.truncf %11 : vector<32x384xf32> to vector<32x384xbf16>
    %c0_23 = arith.constant 0 : index
    %c0_24 = arith.constant 0 : index
    %13 = vector.load %arg1[%c0_23, %c0_24] : memref<384x128xbf16, #tpu.memory_space<vmem>>, vector<384x128xbf16>
    %cst_25 = arith.constant dense<0.000000e+00> : vector<32x128xf32>
    %14 = tpu.matmul %12, %13, %cst_25 {dimension_numbers = #tpu.dot_dimension_numbers<[1], [0], [0], [1], [0, 0, 1, 1], [], []>} : vector<32x384xbf16>, vector<384x128xbf16>, vector<32x128xf32> -> vector<32x128xf32>
    %cst_26 = arith.constant dense<0.000000e+00> : vector<128xf32>
    %15 = vector.multi_reduction <add>, %14, %cst_26 [0] : vector<32x128xf32> to vector<128xf32>
    %16 = vector.shape_cast %15 : vector<128xf32> to vector<1x128xf32>
    %cst_27 = arith.constant 3.125000e-02 : f32
    %17 = vector.broadcast %cst_27 : f32 to vector<1x128xf32>
    %18 = arith.mulf %16, %17 : vector<1x128xf32>
    %19 = arith.mulf %14, %14 : vector<32x128xf32>
    %cst_28 = arith.constant dense<0.000000e+00> : vector<128xf32>
    %20 = vector.multi_reduction <add>, %19, %cst_28 [0] : vector<32x128xf32> to vector<128xf32>
    %21 = vector.shape_cast %20 : vector<128xf32> to vector<1x128xf32>
    %cst_29 = arith.constant 3.125000e-02 : f32
    %22 = vector.broadcast %cst_29 : f32 to vector<1x128xf32>
    %23 = arith.mulf %21, %22 : vector<1x128xf32>
    %24 = arith.mulf %18, %18 : vector<1x128xf32>
    %25 = arith.subf %23, %24 : vector<1x128xf32>
    %cst_30 = arith.constant 0.000000e+00 : f32
    %26 = vector.broadcast %cst_30 : f32 to vector<1x128xf32>
    %27 = arith.maximumf %25, %26 : vector<1x128xf32>
    %c0_31 = arith.constant 0 : index
    %c0_32 = arith.constant 0 : index
    %28 = vector.load %arg2[%c0_31, %c0_32] : memref<1x128xf32, #tpu.memory_space<vmem>>, vector<1x128xf32>
    %cst_33 = arith.constant 9.99999974E-6 : f32
    %29 = vector.broadcast %cst_33 : f32 to vector<1x128xf32>
    %30 = arith.addf %27, %29 : vector<1x128xf32>
    %31 = math.rsqrt %30 : vector<1x128xf32>
    %32 = arith.mulf %28, %31 : vector<1x128xf32>
    %c0_34 = arith.constant 0 : index
    %c0_35 = arith.constant 0 : index
    %33 = vector.load %arg3[%c0_34, %c0_35] : memref<1x128xf32, #tpu.memory_space<vmem>>, vector<1x128xf32>
    %34 = arith.mulf %18, %32 : vector<1x128xf32>
    %35 = arith.subf %33, %34 : vector<1x128xf32>
    %36 = vector.broadcast %32 : vector<1x128xf32> to vector<32x128xf32>
    %37 = arith.mulf %14, %36 : vector<32x128xf32>
    %38 = vector.broadcast %35 : vector<1x128xf32> to vector<32x128xf32>
    %39 = arith.addf %37, %38 : vector<32x128xf32>
    %cst_36 = arith.constant 0.000000e+00 : f32
    %40 = vector.broadcast %cst_36 : f32 to vector<32x128xf32>
    %41 = arith.maximumf %39, %40 : vector<32x128xf32>
    %42 = vector.shape_cast %41 : vector<32x128xf32> to vector<2x16x128xf32>
    %c0_37 = arith.constant 0 : index
    %c1_38 = arith.constant 1 : index
    %c0_39 = arith.constant 0 : index
    %43 = vector.load %arg12[%c0_37, %c1_38, %c0_39] : memref<2x18x128xf32, #tpu.memory_space<vmem>>, vector<2x16x128xf32>
    tpu.vector_store %arg12[%c0_37, %c1_38, %c0_39], %42 {strides = array<i32>} : memref<2x18x128xf32, #tpu.memory_space<vmem>>, vector<2x16x128xf32>,
    %c0_40 = arith.constant 0 : index
    %c0_41 = arith.constant 0 : index
    %c0_42 = arith.constant 0 : index
    %44 = vector.load %arg12[%c0_40, %c0_41, %c0_42] : memref<2x18x128xf32, #tpu.memory_space<vmem>>, vector<2x16x128xf32>
    %c0_43 = arith.constant 0 : index
    %c1_44 = arith.constant 1 : index
    %c0_45 = arith.constant 0 : index
    %45 = vector.load %arg12[%c0_43, %c1_44, %c0_45] : memref<2x18x128xf32, #tpu.memory_space<vmem>>, vector<2x16x128xf32>
    %c0_46 = arith.constant 0 : index
    %c2_47 = arith.constant 2 : index
    %c0_48 = arith.constant 0 : index
    %46 = vector.load %arg12[%c0_46, %c2_47, %c0_48] : memref<2x18x128xf32, #tpu.memory_space<vmem>>, vector<2x16x128xf32>
    %47 = tpu.concatenate %44, %45, %46 in 2 : vector<2x16x128xf32>, vector<2x16x128xf32>, vector<2x16x128xf32> -> vector<2x16x384xf32>
    %48 = vector.shape_cast %47 : vector<2x16x384xf32> to vector<32x384xf32>
    %49 = arith.truncf %48 : vector<32x384xf32> to vector<32x384xbf16>
    %c0_49 = arith.constant 0 : index
    %c0_50 = arith.constant 0 : index
    %50 = vector.load %arg4[%c0_49, %c0_50] : memref<384x128xbf16, #tpu.memory_space<vmem>>, vector<384x128xbf16>
    %cst_51 = arith.constant dense<0.000000e+00> : vector<32x128xf32>
    %51 = tpu.matmul %49, %50, %cst_51 {dimension_numbers = #tpu.dot_dimension_numbers<[1], [0], [0], [1], [0, 0, 1, 1], [], []>} : vector<32x384xbf16>, vector<384x128xbf16>, vector<32x128xf32> -> vector<32x128xf32>
    %cst_52 = arith.constant dense<0.000000e+00> : vector<128xf32>
    %52 = vector.multi_reduction <add>, %51, %cst_52 [0] : vector<32x128xf32> to vector<128xf32>
    %53 = vector.shape_cast %52 : vector<128xf32> to vector<1x128xf32>
    %cst_53 = arith.constant 3.125000e-02 : f32
    %54 = vector.broadcast %cst_53 : f32 to vector<1x128xf32>
    %55 = arith.mulf %53, %54 : vector<1x128xf32>
    %56 = arith.mulf %51, %51 : vector<32x128xf32>
    %cst_54 = arith.constant dense<0.000000e+00> : vector<128xf32>
    %57 = vector.multi_reduction <add>, %56, %cst_54 [0] : vector<32x128xf32> to vector<128xf32>
    %58 = vector.shape_cast %57 : vector<128xf32> to vector<1x128xf32>
    %cst_55 = arith.constant 3.125000e-02 : f32
    %59 = vector.broadcast %cst_55 : f32 to vector<1x128xf32>
    %60 = arith.mulf %58, %59 : vector<1x128xf32>
    %61 = arith.mulf %55, %55 : vector<1x128xf32>
    %62 = arith.subf %60, %61 : vector<1x128xf32>
    %cst_56 = arith.constant 0.000000e+00 : f32
    %63 = vector.broadcast %cst_56 : f32 to vector<1x128xf32>
    %64 = arith.maximumf %62, %63 : vector<1x128xf32>
    %c0_57 = arith.constant 0 : index
    %c0_58 = arith.constant 0 : index
    %65 = vector.load %arg5[%c0_57, %c0_58] : memref<1x128xf32, #tpu.memory_space<vmem>>, vector<1x128xf32>
    %cst_59 = arith.constant 9.99999974E-6 : f32
    %66 = vector.broadcast %cst_59 : f32 to vector<1x128xf32>
    %67 = arith.addf %64, %66 : vector<1x128xf32>
    %68 = math.rsqrt %67 : vector<1x128xf32>
    %69 = arith.mulf %65, %68 : vector<1x128xf32>
    %c0_60 = arith.constant 0 : index
    %c0_61 = arith.constant 0 : index
    %70 = vector.load %arg6[%c0_60, %c0_61] : memref<1x128xf32, #tpu.memory_space<vmem>>, vector<1x128xf32>
    %71 = arith.mulf %55, %69 : vector<1x128xf32>
    %72 = arith.subf %70, %71 : vector<1x128xf32>
    %73 = vector.broadcast %69 : vector<1x128xf32> to vector<32x128xf32>
    %74 = arith.mulf %51, %73 : vector<32x128xf32>
    %75 = vector.broadcast %72 : vector<1x128xf32> to vector<32x128xf32>
    %76 = arith.addf %74, %75 : vector<32x128xf32>
    %cst_62 = arith.constant 0.000000e+00 : f32
    %77 = vector.broadcast %cst_62 : f32 to vector<32x128xf32>
    %78 = arith.maximumf %76, %77 : vector<32x128xf32>
    %79 = vector.shape_cast %78 : vector<32x128xf32> to vector<2x16x128xf32>
    %c0_63 = arith.constant 0 : index
    %c1_64 = arith.constant 1 : index
    %c0_65 = arith.constant 0 : index
    %80 = vector.load %arg11[%c0_63, %c1_64, %c0_65] : memref<2x18x128xf32, #tpu.memory_space<vmem>>, vector<2x16x128xf32>
    tpu.vector_store %arg11[%c0_63, %c1_64, %c0_65], %79 {strides = array<i32>} : memref<2x18x128xf32, #tpu.memory_space<vmem>>, vector<2x16x128xf32>,
    %c0_66 = arith.constant 0 : index
    %c0_67 = arith.constant 0 : index
    %c0_68 = arith.constant 0 : index
    %81 = vector.load %arg11[%c0_66, %c0_67, %c0_68] : memref<2x18x128xf32, #tpu.memory_space<vmem>>, vector<2x16x128xf32>
    %c0_69 = arith.constant 0 : index
    %c1_70 = arith.constant 1 : index
    %c0_71 = arith.constant 0 : index
    %82 = vector.load %arg11[%c0_69, %c1_70, %c0_71] : memref<2x18x128xf32, #tpu.memory_space<vmem>>, vector<2x16x128xf32>
    %c0_72 = arith.constant 0 : index
    %c2_73 = arith.constant 2 : index
    %c0_74 = arith.constant 0 : index
    %83 = vector.load %arg11[%c0_72, %c2_73, %c0_74] : memref<2x18x128xf32, #tpu.memory_space<vmem>>, vector<2x16x128xf32>
    %84 = tpu.concatenate %81, %82, %83 in 2 : vector<2x16x128xf32>, vector<2x16x128xf32>, vector<2x16x128xf32> -> vector<2x16x384xf32>
    %85 = vector.shape_cast %84 : vector<2x16x384xf32> to vector<32x384xf32>
    %86 = arith.truncf %85 : vector<32x384xf32> to vector<32x384xbf16>
    %c0_75 = arith.constant 0 : index
    %c0_76 = arith.constant 0 : index
    %87 = vector.load %arg7[%c0_75, %c0_76] : memref<384x128xbf16, #tpu.memory_space<vmem>>, vector<384x128xbf16>
    %cst_77 = arith.constant dense<0.000000e+00> : vector<32x128xf32>
    %88 = tpu.matmul %86, %87, %cst_77 {dimension_numbers = #tpu.dot_dimension_numbers<[1], [0], [0], [1], [0, 0, 1, 1], [], []>} : vector<32x384xbf16>, vector<384x128xbf16>, vector<32x128xf32> -> vector<32x128xf32>
    %cst_78 = arith.constant dense<0.000000e+00> : vector<128xf32>
    %89 = vector.multi_reduction <add>, %88, %cst_78 [0] : vector<32x128xf32> to vector<128xf32>
    %90 = vector.shape_cast %89 : vector<128xf32> to vector<1x128xf32>
    %cst_79 = arith.constant 3.125000e-02 : f32
    %91 = vector.broadcast %cst_79 : f32 to vector<1x128xf32>
    %92 = arith.mulf %90, %91 : vector<1x128xf32>
    %93 = arith.mulf %88, %88 : vector<32x128xf32>
    %cst_80 = arith.constant dense<0.000000e+00> : vector<128xf32>
    %94 = vector.multi_reduction <add>, %93, %cst_80 [0] : vector<32x128xf32> to vector<128xf32>
    %95 = vector.shape_cast %94 : vector<128xf32> to vector<1x128xf32>
    %cst_81 = arith.constant 3.125000e-02 : f32
    %96 = vector.broadcast %cst_81 : f32 to vector<1x128xf32>
    %97 = arith.mulf %95, %96 : vector<1x128xf32>
    %98 = arith.mulf %92, %92 : vector<1x128xf32>
    %99 = arith.subf %97, %98 : vector<1x128xf32>
    %cst_82 = arith.constant 0.000000e+00 : f32
    %100 = vector.broadcast %cst_82 : f32 to vector<1x128xf32>
    %101 = arith.maximumf %99, %100 : vector<1x128xf32>
    %c0_83 = arith.constant 0 : index
    %c0_84 = arith.constant 0 : index
    %102 = vector.load %arg8[%c0_83, %c0_84] : memref<1x128xf32, #tpu.memory_space<vmem>>, vector<1x128xf32>
    %cst_85 = arith.constant 9.99999974E-6 : f32
    %103 = vector.broadcast %cst_85 : f32 to vector<1x128xf32>
    %104 = arith.addf %101, %103 : vector<1x128xf32>
    %105 = math.rsqrt %104 : vector<1x128xf32>
    %106 = arith.mulf %102, %105 : vector<1x128xf32>
    %c0_86 = arith.constant 0 : index
    %c0_87 = arith.constant 0 : index
    %107 = vector.load %arg9[%c0_86, %c0_87] : memref<1x128xf32, #tpu.memory_space<vmem>>, vector<1x128xf32>
    %108 = arith.mulf %92, %106 : vector<1x128xf32>
    %109 = arith.subf %107, %108 : vector<1x128xf32>
    %110 = vector.broadcast %106 : vector<1x128xf32> to vector<32x128xf32>
    %111 = arith.mulf %88, %110 : vector<32x128xf32>
    %112 = vector.broadcast %109 : vector<1x128xf32> to vector<32x128xf32>
    %113 = arith.addf %111, %112 : vector<32x128xf32>
    %cst_88 = arith.constant 0.000000e+00 : f32
    %114 = vector.broadcast %cst_88 : f32 to vector<32x128xf32>
    %115 = arith.maximumf %113, %114 : vector<32x128xf32>
    %c0_89 = arith.constant 0 : index
    %c0_90 = arith.constant 0 : index
    %116 = vector.load %arg10[%c0_89, %c0_90] : memref<32x128xf32, #tpu.memory_space<vmem>>, vector<32x128xf32>
    tpu.vector_store %arg10[%c0_89, %c0_90], %115 {strides = array<i32>} : memref<32x128xf32, #tpu.memory_space<vmem>>, vector<32x128xf32>,
    return
  }
}

</mosaic_0001>

<bundles_post_ra>
// kernel: encoder_forward.1
= control target key start
LH: loop header
LB: loop body
LE: loop exit
PB: predicated region body
PF: predicated region fallthrough
CT: control target
= control target key end

     0   :  { %15 = vsyncpa [#allocation5], 0  ;;  %s1716_s0 = inlined_call_operand.vmem [shape: f32[2,16,128], index: 0, kind: input, shape index: {}]   ;;  %s1717_s1 = inlined_call_operand.hbm [shape: bf16[384,128], index: 1, kind: input, shape index: {}]   ;;  %s1718_s2 = inlined_call_operand.vmem [shape: f32[1,128], index: 2, kind: input, shape index: {}]   ;;  %s1719_s3 = inlined_call_operand.vmem [shape: f32[1,128], index: 3, kind: input, shape index: {}]   ;;  %s1720_s4 = inlined_call_operand.hbm [shape: bf16[384,128], index: 4, kind: input, shape index: {}]   ;;  %s1721_s5 = inlined_call_operand.vmem [shape: f32[1,128], index: 5, kind: input, shape index: {}]   ;;  %s1722_s6 = inlined_call_operand.vmem [shape: f32[1,128], index: 6, kind: input, shape index: {}]   ;;  %s1723_s7 = inlined_call_operand.hbm [shape: bf16[384,128], index: 7, kind: input, shape index: {}]   ;;  %s1724_s8 = inlined_call_operand.vmem [shape: f32[1,128], index: 8, kind: input, shape index: {}]   ;;  %s1725_s9 = inlined_call_operand.vmem [shape: f32[1,128], index: 9, kind: input, shape index: {}]   ;;  %s1726_s10 = inlined_call_operand.vmem [shape: f32[32,128], index: 10, kind: output, shape index: {}]  }
   0x1   :  { %16 = vsyncpa [#allocation7], 0  ;;  %s40_s15 = sshll.u32 %s1720_s4, 4  ;;  %s1556_s16 = smov [#allocation6]   ;;  %s41_s15 = int_to_ptr.hbm [resolvable:$true] %s40_s15 }
   0x2   :  { %s42_s17 = sshll.u32 %s1556_s16, 4  ;;  %s23_s20 = sshll.u32 %s1717_s1, 4  ;;  %s43_s17 = int_to_ptr.vmem [resolvable:$true] %s42_s17  ;;  %s24_s20 = int_to_ptr.hbm [resolvable:$true] %s23_s20 }
   0x3   :  { %s1557_s21 = smov 64   ;;  %s1558_s22 = smov 4  }
   0x4   :  { %48 = dma.hbm_to_vmem [thread:$0]  %s41_s15, 3072, %s43_s17, [#allocation7], %s1557_s21, %s1557_s21, %s1558_s22  }
   0x5   :  { %s1559_s23 = smov [#allocation4]   ;;  %s57_s27 = sshll.u32 %s1723_s7, 4  ;;  %s58_s27 = int_to_ptr.hbm [resolvable:$true] %s57_s27 }
   0x6   :  { %s25_s24 = sshll.u32 %s1559_s23, 4  ;;  %s1560_s4 = smov [#allocation8]   ;;  %s26_s24 = int_to_ptr.vmem [resolvable:$true] %s25_s24 }
   0x7   :  { %31 = dma.hbm_to_vmem [thread:$0]  %s24_s20, 3072, %s26_s24, [#allocation5], %s1557_s21, %s1557_s21, %s1558_s22  }
   0x8   :  { %s59_s28 = sshll.u32 %s1560_s4, 4  ;;  %s60_s28 = int_to_ptr.vmem [resolvable:$true] %s59_s28 }
   0x9   :  { %65 = dma.hbm_to_vmem [thread:$0]  %s58_s27, 3072, %s60_s28, [#allocation7], %s1557_s21, %s1557_s21, %s1558_s22  }
   0xa   :  { %1552 = dma.done.wait [#allocation5], 3072  }
   0xb   :  { %1553 = vsyncadd [#allocation5], 4294964224 }
   0xc   :  { %1554 = dma.done.wait [#allocation7], 6144  }
   0xd   :  { %1555 = vsyncadd [#allocation7], 4294961152  ;;  %v1561_v0 = vmov 0.0   ;;  %v1395_v1 = vld [vmem:[#allocation4 + $0x38] sm:$0xff]  ;;  %v1394_v4 = vld [vmem:[#allocation4 + $0x30] sm:$0xff] }
   0xe   :  { %82 = vst [vmem:[#allocation2] sm:$0x1] %v1561_v0  ;;  %v1403_v2 = vld [vmem:[#allocation4 + $0x78] sm:$0xff]  ;;  %308 = vmatpush.bf16.msra.mxu0 %v1395_v1  ;;  %v1402_v5 = vld [vmem:[#allocation4 + $0x70] sm:$0xff]  ;;  %v1393_v7 = vld [vmem:[#allocation4 + $0x28] sm:$0xff] }
   0xf   :  { %83 = vst [vmem:[#allocation2 + $0x18] sm:$0x1] %v1561_v0  ;;  %v1411_v3 = vld [vmem:[#allocation4 + $0xb8] sm:$0xff]  ;;  %327 = vmatpush.bf16.msra.mxu1 %v1403_v2  ;;  %v1410_v6 = vld [vmem:[#allocation4 + $0xb0] sm:$0xff]  ;;  %v1401_v8 = vld [vmem:[#allocation4 + $0x68] sm:$0xff] }
  0x10   :  { %84 = vst [vmem:[#allocation2 + $0x11] sm:$0x1] %v1561_v0  ;;  %346 = vmatpush.bf16.msra.mxu2 %v1411_v3  ;;  %v1409_v9 = vld [vmem:[#allocation4 + $0xa8] sm:$0xff]  ;;  %v90_v10 = vld [vmem:[%s1716_s0] sm:$0xff]  ;;  %v92_v12 = vld [vmem:[%s1716_s0 + $0x10] sm:$0xff] }
  0x11   :  { %85 = vst [vmem:[#allocation2 + $0x29] sm:$0x1] %v1561_v0  ;;  %v91_v11 = vld [vmem:[%s1716_s0 + $0x8] sm:$0xff]  ;;  %v93_v13 = vld [vmem:[%s1716_s0 + $0x18] sm:$0xff]  ;;  %v1392_v14 = vld [vmem:[#allocation4 + $0x20] sm:$0xff] }
  0x12   :  { %86 = vst [vmem:[#allocation3] sm:$0x1] %v1561_v0  ;;  %309 = vmatpush.bf16.msra.mxu0 %v1394_v4  ;;  %v1400_v15 = vld [vmem:[#allocation4 + $0x60] sm:$0xff]  ;;  %v1391_v17 = vld [vmem:[#allocation4 + $0x18] sm:$0xff]  ;;  %v1390_v20 = vld [vmem:[#allocation4 + $0x10] sm:$0xff]  ;;  %v111_v34 = vpack.c.bf16 %v91_v11, %v90_v10  ;;  %v114_v41 = vpack.c.bf16 %v93_v13, %v92_v12 }
  0x13   :  { %87 = vst [vmem:[#allocation3 + $0x18] sm:$0x1] %v1561_v0  ;;  %328 = vmatpush.bf16.msra.mxu1 %v1402_v5  ;;  %v1408_v16 = vld [vmem:[#allocation4 + $0xa0] sm:$0xff]  ;;  %v1399_v18 = vld [vmem:[#allocation4 + $0x58] sm:$0xff]  ;;  %v1398_v21 = vld [vmem:[#allocation4 + $0x50] sm:$0xff] }
  0x14   :  { %88 = vst [vmem:[#allocation3 + $0x11] sm:$0x1] %v1561_v0  ;;  %347 = vmatpush.bf16.msra.mxu2 %v1410_v6  ;;  %v1407_v19 = vld [vmem:[#allocation4 + $0x98] sm:$0xff]  ;;  %v1406_v22 = vld [vmem:[#allocation4 + $0x90] sm:$0xff]  ;;  %v1389_v23 = vld [vmem:[#allocation4 + $0x8] sm:$0xff] }
  0x15   :  { %89 = vst [vmem:[#allocation3 + $0x29] sm:$0x1] %v1561_v0  ;;  %v1397_v24 = vld [vmem:[#allocation4 + $0x48] sm:$0xff]  ;;  %v1388_v26 = vld [vmem:[#allocation4] sm:$0xff]  ;;  %v1427_v61 = vld [vmem:[#allocation6 + $0x78] sm:$0xff] }
  0x16   :  { %94 = vst [vmem:[#allocation2 + $0x1] sm:$0xff] %v90_v10  ;;  %310 = vmatpush.bf16.msra.mxu0 %v1393_v7  ;;  %v1405_v25 = vld [vmem:[#allocation4 + $0x88] sm:$0xff]  ;;  %v1396_v27 = vld [vmem:[#allocation4 + $0x40] sm:$0xff]  ;;  %v1426_v6 = vld [vmem:[#allocation6 + $0x70] sm:$0xff] }
  0x17   :  { %329 = vmatpush.bf16.msra.mxu1 %v1401_v8  ;;  %95 = vst [vmem:[#allocation2 + $0x9] sm:$0xff] %v91_v11  ;;  %v1404_v30 = vld [vmem:[#allocation4 + $0x80] sm:$0xff] }
  0x18   :  { %348 = vmatpush.bf16.msra.mxu2 %v1409_v9  ;;  %96 = vst [vmem:[#allocation2 + $0x19] sm:$0xff] %v92_v12  ;;  %v1419_v12 = vld [vmem:[#allocation6 + $0x38] sm:$0xff] }
  0x19   :  { %97 = vst [vmem:[#allocation2 + $0x21] sm:$0xff] %v93_v13  ;;  %v1435_v13 = vld [vmem:[#allocation6 + $0xb8] sm:$0xff]  ;;  %640 = vmatpush.bf16.msra.mxu3 %v1419_v12 }
  0x1a   :  { %311 = vmatpush.bf16.msra.mxu0 %v1392_v14  ;;  %v1425_v14 = vld [vmem:[#allocation6 + $0x68] sm:$0xff] }
  0x1b   :  { %330 = vmatpush.bf16.msra.mxu1 %v1400_v15 }
  0x1c   :  { %349 = vmatpush.bf16.msra.mxu2 %v1408_v16 }
  0x1d   :  { %v98_v28 = vld [vmem:[#allocation2] sm:$0xff] }
  0x1e   :  { %312 = vmatpush.bf16.msra.mxu0 %v1391_v17  ;;  %v99_v29 = vld [vmem:[#allocation2 + $0x8] sm:$0xff] }
  0x1f   :  { %331 = vmatpush.bf16.msra.mxu1 %v1399_v18  ;;  %v106_v31 = vld [vmem:[#allocation2 + $0x2] sm:$0xff]  ;;  %v107_v32 = vld [vmem:[#allocation2 + $0xa] sm:$0xff]  ;;  %v110_v33 = vpack.c.bf16 %v99_v29, %v98_v28  ;;  %v100_v36 = vld [vmem:[#allocation2 + $0x18] sm:$0xff] }
  0x20   :  { %350 = vmatpush.bf16.msra.mxu2 %v1407_v19  ;;  %v112_v35 = vpack.c.bf16 %v107_v32, %v106_v31  ;;  %v101_v37 = vld [vmem:[#allocation2 + $0x20] sm:$0xff]  ;;  %v1418_v19 = vld [vmem:[#allocation6 + $0x30] sm:$0xff]  ;;  %v1423_v28 = vld [vmem:[#allocation6 + $0x58] sm:$0xff] }
  0x21   :  { %v108_v38 = vld [vmem:[#allocation2 + $0x1a] sm:$0xff]  ;;  %v109_v39 = vld [vmem:[#allocation2 + $0x22] sm:$0xff]  ;;  %v113_v40 = vpack.c.bf16 %v101_v37, %v100_v36  ;;  %641 = vmatpush.bf16.msra.mxu3 %v1418_v19 }
  0x22   :  { %313 = vmatpush.bf16.msra.mxu0 %v1390_v20  ;;  %v115_v42 = vpack.c.bf16 %v109_v39, %v108_v38  ;;  %v1434_v20 = vld [vmem:[#allocation6 + $0xb0] sm:$0xff]  ;;  %v1415_v39 = vld [vmem:[#allocation6 + $0x18] sm:$0xff] }
  0x23   :  { %332 = vmatpush.bf16.msra.mxu1 %v1398_v21  ;;  %v1424_v21 = vld [vmem:[#allocation6 + $0x60] sm:$0xff] }
  0x24   :  { %351 = vmatpush.bf16.msra.mxu2 %v1406_v22 }
  0x26   :  { %314 = vmatpush.bf16.msra.mxu0 %v1389_v23 }
  0x27   :  { %333 = vmatpush.bf16.msra.mxu1 %v1397_v24 }
  0x28   :  { %352 = vmatpush.bf16.msra.mxu2 %v1405_v25 }
  0x2a   :  { %315 = vmatpush.bf16.msra.mxu0 %v1388_v26  ;;  %v1417_v26 = vld [vmem:[#allocation6 + $0x28] sm:$0xff] }
  0x2b   :  { %334 = vmatpush.bf16.msra.mxu1 %v1396_v27  ;;  %v1433_v27 = vld [vmem:[#allocation6 + $0xa8] sm:$0xff]  ;;  %642 = vmatpush.bf16.msra.mxu3 %v1417_v26 }
  0x2c   :  { %353 = vmatpush.bf16.msra.mxu2 %v1404_v30 }
  0x2d   :  { %316 = vmatmul.bf16.vlgmr.msra.gmra.mxu0 %v110_v33  ;;  %v1416_v33 = vld [vmem:[#allocation6 + $0x20] sm:$0xff] }
  0x2e   :  { %335 = vmatmul.bf16.vlgmr.msra.gmra.mxu1 %v111_v34  ;;  %659 = vmatpush.bf16.msrb.mxu0 %v1427_v61  ;;  %v1432_v34 = vld [vmem:[#allocation6 + $0xa0] sm:$0xff] }
  0x2f   :  { %354 = vmatmul.bf16.vlgmr.msra.gmra.mxu2 %v112_v35  ;;  %678 = vmatpush.bf16.msrb.mxu1 %v1435_v13  ;;  %v1422_v35 = vld [vmem:[#allocation6 + $0x50] sm:$0xff] }
  0x30   :  { %643 = vmatpush.bf16.msra.mxu3 %v1416_v33 }
  0x32   :  { %660 = vmatpush.bf16.msrb.mxu0 %v1426_v6 }
  0x33   :  { %679 = vmatpush.bf16.msrb.mxu1 %v1434_v20 }
  0x34   :  { %644 = vmatpush.bf16.msra.mxu3 %v1415_v39 }
  0x36   :  { %661 = vmatpush.bf16.msrb.mxu0 %v1425_v14 }
  0x37   :  { %680 = vmatpush.bf16.msrb.mxu1 %v1433_v27 }
  0x3a   :  { %662 = vmatpush.bf16.msrb.mxu0 %v1424_v21 }
  0x3b   :  { %681 = vmatpush.bf16.msrb.mxu1 %v1432_v34 }
  0x3d   :  { %321 = vmatmul.bf16.gmra.mxu0 %v113_v40  ;;  %v1431_v40 = vld [vmem:[#allocation6 + $0x98] sm:$0xff] }
  0x3e   :  { %340 = vmatmul.bf16.gmra.mxu1 %v114_v41  ;;  %663 = vmatpush.bf16.msrb.mxu0 %v1423_v28  ;;  %v1421_v41 = vld [vmem:[#allocation6 + $0x48] sm:$0xff] }
  0x3f   :  { %359 = vmatmul.bf16.gmra.mxu2 %v115_v42  ;;  %682 = vmatpush.bf16.msrb.mxu1 %v1431_v40 }
  0x42   :  { %664 = vmatpush.bf16.msrb.mxu0 %v1422_v35 }
  0x46   :  { %665 = vmatpush.bf16.msrb.mxu0 %v1421_v41 }
  0xaa   :  { %v317_v43 = vpop.f32.mrf.mxu0 }
  0xab   :  { %v336_v44 = vpop.f32.mrf.mxu1 }
  0xac   :  { %v337_v51 = vadd.f32 %v336_v44, %v317_v43  ;;  %v1414_v44 = vld [vmem:[#allocation6 + $0x10] sm:$0xff] }
  0xad   :  { %645 = vmatpush.bf16.msra.mxu3 %v1414_v44 }
  0xb2   :  { %v355_v45 = vpop.f32.mrf.mxu2  ;;  %v319_v46 = vpop.f32.mrf.mxu0 }
  0xb3   :  { %v338_v47 = vpop.f32.mrf.mxu1  ;;  %v1640_v56 = vadd.f32 %v355_v45, %v337_v51  ;;  %v1430_v45 = vld [vmem:[#allocation6 + $0x90] sm:$0xff] }
  0xb4   :  { %v339_v52 = vadd.f32 %v338_v47, %v319_v46  ;;  %v1420_v46 = vld [vmem:[#allocation6 + $0x40] sm:$0xff]  ;;  %683 = vmatpush.bf16.msrb.mxu1 %v1430_v45  ;;  %v1413_v47 = vld [vmem:[#allocation6 + $0x8] sm:$0xff] }
  0xb5   :  { %v375_v62 = vmul.f32 %v1640_v56, %v1640_v56  ;;  %666 = vmatpush.bf16.msrb.mxu0 %v1420_v46  ;;  %646 = vmatpush.bf16.msra.mxu3 %v1413_v47 }
  0xba   :  { %v357_v48 = vpop.f32.mrf.mxu2  ;;  %v322_v49 = vpop.f32.mrf.mxu0 }
  0xbb   :  { %v341_v50 = vpop.f32.mrf.mxu1  ;;  %v1638_v55 = vadd.f32 %v357_v48, %v339_v52  ;;  %v1429_v48 = vld [vmem:[#allocation6 + $0x88] sm:$0xff] }
  0xbc   :  { %v342_v53 = vadd.f32 %v341_v50, %v322_v49  ;;  %684 = vmatpush.bf16.msrb.mxu1 %v1429_v48  ;;  %v1412_v49 = vld [vmem:[#allocation6] sm:$0xff] }
  0xbd   :  { %v376_v60 = vmul.f32 %v1638_v55, %v1638_v55  ;;  %v365_v63 = vadd.f32 %v1638_v55, %v1640_v56  ;;  %v1428_v50 = vld [vmem:[#allocation6 + $0x80] sm:$0xff]  ;;  %647 = vmatpush.bf16.msra.mxu3 %v1412_v49 }
  0xbf   :  { %v379_v3 = vadd.f32 %v376_v60, %v375_v62 }
  0xc0   :  { %685 = vmatpush.bf16.msrb.mxu1 %v1428_v50 }
  0xc2   :  { %v360_v54 = vpop.f32.mrf.mxu2  ;;  %v324_v58 = vpop.f32.mrf.mxu0 }
  0xc3   :  { %v1642_v57 = vadd.f32 %v360_v54, %v342_v53  ;;  %v343_v59 = vpop.f32.mrf.mxu1 }
  0xc4   :  { %v344_v1 = vadd.f32 %v343_v59, %v324_v58  ;;  %v392_v59 = vld [vmem:[%s1718_s2] sm:$0x1] }
  0xc5   :  { %v377_v0 = vmul.f32 %v1642_v57, %v1642_v57  ;;  %v366_v4 = vadd.f32 %v365_v63, %v1642_v57  ;;  %v405_v63 = vld [vmem:[%s1719_s3] sm:$0x1] }
  0xc7   :  { %v380_v7 = vadd.f32 %v379_v3, %v377_v0 }
  0xca   :  { %v362_v2 = vpop.f32.mrf.mxu2 }
  0xcb   :  { %v1653_v5 = vadd.f32 %v362_v2, %v344_v1 }
  0xcd   :  { %v367_v8 = vadd.f32 %v366_v4, %v1653_v5  ;;  %v378_v9 = vmul.f32 %v1653_v5, %v1653_v5 }
  0xcf   :  { %v368_v10 = vrot.slane %v367_v8, 4  ;;  %v381_v11 = vadd.f32 %v380_v7, %v378_v9 }
  0xd1   :  { %v369_v15 = vadd.f32 %v368_v10, %v367_v8  ;;  %v382_v16 = vrot.slane %v381_v11, 4 }
  0xd3   :  { %v370_v17 = vrot.slane %v369_v15, 2  ;;  %v383_v18 = vadd.f32 %v382_v16, %v381_v11 }
  0xd5   :  { %v371_v22 = vadd.f32 %v370_v17, %v369_v15  ;;  %v384_v23 = vrot.slane %v383_v18, 2 }
  0xd7   :  { %v372_v24 = vrot.slane %v371_v22, 1  ;;  %v385_v25 = vadd.f32 %v384_v23, %v383_v18 }
  0xd9   :  { %v373_v29 = vadd.f32 %v372_v24, %v371_v22  ;;  %v386_v30 = vrot.slane %v385_v25, 1 }
  0xdb   :  { %v374_v31 = vmul.f32 0.03125, %v373_v29  ;;  %v387_v32 = vadd.f32 %v386_v30, %v385_v25 }
  0xdd   :  { %v388_v36 = vmul.f32 0.03125, %v387_v32  ;;  %v389_v37 = vmul.f32 %v374_v31, %v374_v31 }
  0xdf   :  { %v390_v38 = vsub.f32 %v388_v36, %v389_v37 }
  0xe1   :  { %v391_v42 = vmax.f32 %v390_v38, 0.0 }
  0xe3   :  { %v393_v43 = vadd.f32 1e-05, %v391_v42 }
  0xe5   :  { %1474 = vrsqrt.f32 %v393_v43  ;;  %vm400_vm1 = vweird.f32 %v393_v43 }
  0xeb   :  { %v1475_v51 = vpop.eup %1474 }
  0xec   :  { %v395_v52 = vmul.f32 %v1475_v51, %v393_v43  ;;  %vm401_vm0 = vweird.f32 %v1475_v51  ;;  %v1451_v43 = vld [vmem:[#allocation8 + $0x78] sm:$0xff] }
  0xed   :  { %vm402_vm2 = vmor %vm400_vm1, %vm401_vm0  ;;  %991 = vmatpush.bf16.msrb.mxu3 %v1451_v43  ;;  %v724_v43 = vld [vmem:[%s1721_s5] sm:$0x1] }
  0xee   :  { %v396_v53 = vmul.f32 %v1475_v51, %v395_v52 }
  0xf0   :  { %v397_v54 = vmul.f32 0.5, %v396_v53 }
  0xf2   :  { %v398_v58 = vsub.f32 1.5, %v397_v54  ;;  %v1450_v54 = vld [vmem:[#allocation8 + $0x70] sm:$0xff] }
  0xf3   :  { %992 = vmatpush.bf16.msrb.mxu3 %v1450_v54 }
  0xf4   :  { %v399_v60 = vmul.f32 %v1475_v51, %v398_v58 }
  0xf6   :  { %v403_v61 = vsel %vm402_vm2, %v1475_v51, %v399_v60 }
  0xf7   :  { %v404_v62 = vmul.f32 %v403_v61, %v392_v59 }
  0xf9   :  { %v406_v0 = vmul.f32 %v404_v62, %v374_v31  ;;  %v409_v1 = vperm.slane %v404_v62, 0 }
  0xfb   :  { %v407_v2 = vsub.f32 %v405_v63, %v406_v0  ;;  %v411_v3 = vmul.f32 %v409_v1, %v1640_v56  ;;  %v412_v4 = vmul.f32 %v409_v1, %v1638_v55  ;;  %v413_v6 = vmul.f32 %v409_v1, %v1642_v57  ;;  %v1443_v63 = vld [vmem:[#allocation8 + $0x38] sm:$0xff] }
  0xfc   :  { %v414_v7 = vmul.f32 %v409_v1, %v1653_v5  ;;  %v1459_v0 = vld [vmem:[#allocation8 + $0xb8] sm:$0xff]  ;;  %v1449_v1 = vld [vmem:[#allocation8 + $0x68] sm:$0xff]  ;;  %972 = vmatpush.bf16.msrb.mxu2 %v1443_v63 }
  0xfd   :  { %v416_v8 = vperm.slane %v407_v2, 0  ;;  %1010 = vmatpush.bf16.msra.mxu0 %v1459_v0  ;;  %1460 = vmatpush.bf16.msra.mxu1 %v1459_v0 }
  0xfe   :  { %993 = vmatpush.bf16.msrb.mxu3 %v1449_v1 }
  0xff   :  { %v418_v9 = vadd.f32 %v416_v8, %v411_v3  ;;  %v419_v10 = vadd.f32 %v416_v8, %v412_v4  ;;  %v420_v11 = vadd.f32 %v416_v8, %v413_v6  ;;  %v421_v12 = vadd.f32 %v416_v8, %v414_v7  ;;  %v1442_v7 = vld [vmem:[#allocation8 + $0x30] sm:$0xff] }
 0x100   :  { %v1458_v8 = vld [vmem:[#allocation8 + $0xb0] sm:$0xff]  ;;  %973 = vmatpush.bf16.msrb.mxu2 %v1442_v7 }
 0x101   :  { %v422_v13 = vmax.f32 %v418_v9, 0.0  ;;  %v423_v14 = vmax.f32 %v419_v10, 0.0  ;;  %v424_v15 = vmax.f32 %v420_v11, 0.0  ;;  %v425_v16 = vmax.f32 %v421_v12, 0.0  ;;  %v1448_v9 = vld [vmem:[#allocation8 + $0x60] sm:$0xff]  ;;  %1011 = vmatpush.bf16.msra.mxu0 %v1458_v8  ;;  %1461 = vmatpush.bf16.msra.mxu1 %v1458_v8 }
 0x102   :  { %994 = vmatpush.bf16.msrb.mxu3 %v1448_v9 }
 0x103   :  { %426 = vst [vmem:[#allocation3 + $0x1] sm:$0xff] %v422_v13  ;;  %v443_v17 = vpack.c.bf16 %v423_v14, %v422_v13  ;;  %v446_v20 = vpack.c.bf16 %v425_v16, %v424_v15 }
 0x104   :  { %427 = vst [vmem:[#allocation3 + $0x9] sm:$0xff] %v423_v14  ;;  %v1441_v14 = vld [vmem:[#allocation8 + $0x28] sm:$0xff] }
 0x105   :  { %428 = vst [vmem:[#allocation3 + $0x19] sm:$0xff] %v424_v15  ;;  %667 = vmatmul.bf16.vlgmr.msrb.gmra.mxu0 %v443_v17  ;;  %v1457_v15 = vld [vmem:[#allocation8 + $0xa8] sm:$0xff]  ;;  %974 = vmatpush.bf16.msrb.mxu2 %v1441_v14 }
 0x106   :  { %429 = vst [vmem:[#allocation3 + $0x21] sm:$0xff] %v425_v16  ;;  %v1447_v16 = vld [vmem:[#allocation8 + $0x58] sm:$0xff]  ;;  %1012 = vmatpush.bf16.msra.mxu0 %v1457_v15  ;;  %1462 = vmatpush.bf16.msra.mxu1 %v1457_v15 }
 0x107   :  { %995 = vmatpush.bf16.msrb.mxu3 %v1447_v16 }
 0x10a   :  { %v430_v55 = vld [vmem:[#allocation3] sm:$0xff] }
 0x10b   :  { %v431_v56 = vld [vmem:[#allocation3 + $0x8] sm:$0xff] }
 0x10c   :  { %v438_v57 = vld [vmem:[#allocation3 + $0x2] sm:$0xff]  ;;  %v439_v18 = vld [vmem:[#allocation3 + $0xa] sm:$0xff]  ;;  %v442_v5 = vpack.c.bf16 %v431_v56, %v430_v55  ;;  %v432_v21 = vld [vmem:[#allocation3 + $0x18] sm:$0xff] }
 0x10d   :  { %v444_v19 = vpack.c.bf16 %v439_v18, %v438_v57  ;;  %v433_v22 = vld [vmem:[#allocation3 + $0x20] sm:$0xff]  ;;  %v1440_v18 = vld [vmem:[#allocation8 + $0x20] sm:$0xff] }
 0x10e   :  { %648 = vmatmul.bf16.vlgmr.msra.gmra.mxu3 %v442_v5  ;;  %v440_v23 = vld [vmem:[#allocation3 + $0x1a] sm:$0xff]  ;;  %v441_v24 = vld [vmem:[#allocation3 + $0x22] sm:$0xff]  ;;  %v445_v25 = vpack.c.bf16 %v433_v22, %v432_v21  ;;  %v1456_v5 = vld [vmem:[#allocation8 + $0xa0] sm:$0xff]  ;;  %975 = vmatpush.bf16.msrb.mxu2 %v1440_v18 }
 0x10f   :  { %686 = vmatmul.bf16.vlgmr.msrb.gmra.mxu1 %v444_v19  ;;  %v447_v26 = vpack.c.bf16 %v441_v24, %v440_v23  ;;  %v1446_v19 = vld [vmem:[#allocation8 + $0x50] sm:$0xff]  ;;  %1013 = vmatpush.bf16.msra.mxu0 %v1456_v5  ;;  %v1439_v23 = vld [vmem:[#allocation8 + $0x18] sm:$0xff] }
 0x110   :  { %1463 = vmatpush.bf16.msra.mxu1 %v1456_v5  ;;  %996 = vmatpush.bf16.msrb.mxu3 %v1446_v19  ;;  %v1455_v24 = vld [vmem:[#allocation8 + $0x98] sm:$0xff] }
 0x112   :  { %976 = vmatpush.bf16.msrb.mxu2 %v1439_v23 }
 0x113   :  { %1014 = vmatpush.bf16.msra.mxu0 %v1455_v24 }
 0x114   :  { %1464 = vmatpush.bf16.msra.mxu1 %v1455_v24 }
 0x115   :  { %672 = vmatmul.bf16.gmra.mxu0 %v446_v20 }
 0x11e   :  { %653 = vmatmul.bf16.gmra.mxu3 %v445_v25  ;;  %v1445_v25 = vld [vmem:[#allocation8 + $0x48] sm:$0xff] }
 0x11f   :  { %691 = vmatmul.bf16.gmra.mxu1 %v447_v26  ;;  %997 = vmatpush.bf16.msrb.mxu3 %v1445_v25 }
 0x182   :  { %v668_v27 = vpop.f32.mrf.mxu0 }
 0x18a   :  { %v670_v30 = vpop.f32.mrf.mxu0 }
 0x18c   :  { %v687_v28 = vpop.f32.mrf.mxu1 }
 0x191   :  { %v649_v29 = vpop.f32.mrf.mxu3 }
 0x192   :  { %v673_v33 = vpop.f32.mrf.mxu0  ;;  %v669_v37 = vadd.f32 %v668_v27, %v649_v29  ;;  %v1454_v29 = vld [vmem:[#allocation8 + $0x90] sm:$0xff] }
 0x193   :  { %1015 = vmatpush.bf16.msra.mxu0 %v1454_v29  ;;  %1465 = vmatpush.bf16.msra.mxu1 %v1454_v29 }
 0x194   :  { %v689_v31 = vpop.f32.mrf.mxu1  ;;  %v1670_v40 = vadd.f32 %v687_v28, %v669_v37  ;;  %v1438_v28 = vld [vmem:[#allocation8 + $0x10] sm:$0xff] }
 0x195   :  { %977 = vmatpush.bf16.msrb.mxu2 %v1438_v28 }
 0x196   :  { %v707_v46 = vmul.f32 %v1670_v40, %v1670_v40 }
 0x199   :  { %v651_v32 = vpop.f32.mrf.mxu3 }
 0x19a   :  { %v671_v34 = vadd.f32 %v670_v30, %v651_v32  ;;  %v675_v44 = vpop.f32.mrf.mxu0  ;;  %v1444_v30 = vld [vmem:[#allocation8 + $0x40] sm:$0xff]  ;;  %v1453_v32 = vld [vmem:[#allocation8 + $0x88] sm:$0xff] }
 0x19b   :  { %998 = vmatpush.bf16.msrb.mxu3 %v1444_v30  ;;  %1016 = vmatpush.bf16.msra.mxu0 %v1453_v32 }
 0x19c   :  { %v692_v35 = vpop.f32.mrf.mxu1  ;;  %v1668_v39 = vadd.f32 %v689_v31, %v671_v34  ;;  %v1437_v31 = vld [vmem:[#allocation8 + $0x8] sm:$0xff]  ;;  %v1452_v34 = vld [vmem:[#allocation8 + $0x80] sm:$0xff]  ;;  %1466 = vmatpush.bf16.msra.mxu1 %v1453_v32 }
 0x19d   :  { %978 = vmatpush.bf16.msrb.mxu2 %v1437_v31 }
 0x19e   :  { %v708_v42 = vmul.f32 %v1668_v39, %v1668_v39  ;;  %v697_v47 = vadd.f32 %v1668_v39, %v1670_v40 }
 0x19f   :  { %1017 = vmatpush.bf16.msra.mxu0 %v1452_v34 }
 0x1a0   :  { %v711_v51 = vadd.f32 %v708_v42, %v707_v46  ;;  %1467 = vmatpush.bf16.msra.mxu1 %v1452_v34 }
 0x1a1   :  { %v654_v36 = vpop.f32.mrf.mxu3 }
 0x1a2   :  { %v674_v38 = vadd.f32 %v673_v33, %v654_v36  ;;  %v1436_v33 = vld [vmem:[#allocation8] sm:$0xff] }
 0x1a3   :  { %979 = vmatpush.bf16.msrb.mxu2 %v1436_v33 }
 0x1a4   :  { %v1672_v41 = vadd.f32 %v692_v35, %v674_v38  ;;  %v694_v50 = vpop.f32.mrf.mxu1 }
 0x1a6   :  { %v709_v48 = vmul.f32 %v1672_v41, %v1672_v41  ;;  %v698_v52 = vadd.f32 %v697_v47, %v1672_v41  ;;  %v737_v47 = vld [vmem:[%s1722_s6] sm:$0x1] }
 0x1a8   :  { %v712_v58 = vadd.f32 %v711_v51, %v709_v48 }
 0x1a9   :  { %v656_v45 = vpop.f32.mrf.mxu3 }
 0x1aa   :  { %v676_v49 = vadd.f32 %v675_v44, %v656_v45 }
 0x1ac   :  { %v1683_v53 = vadd.f32 %v694_v50, %v676_v49 }
 0x1ae   :  { %v699_v59 = vadd.f32 %v698_v52, %v1683_v53  ;;  %v710_v60 = vmul.f32 %v1683_v53, %v1683_v53 }
 0x1b0   :  { %v700_v61 = vrot.slane %v699_v59, 4  ;;  %v713_v62 = vadd.f32 %v712_v58, %v710_v60 }
 0x1b2   :  { %v701_v2 = vadd.f32 %v700_v61, %v699_v59  ;;  %v714_v3 = vrot.slane %v713_v62, 4 }
 0x1b4   :  { %v702_v4 = vrot.slane %v701_v2, 2  ;;  %v715_v6 = vadd.f32 %v714_v3, %v713_v62 }
 0x1b6   :  { %v703_v10 = vadd.f32 %v702_v4, %v701_v2  ;;  %v716_v11 = vrot.slane %v715_v6, 2 }
 0x1b8   :  { %v704_v12 = vrot.slane %v703_v10, 1  ;;  %v717_v13 = vadd.f32 %v716_v11, %v715_v6 }
 0x1ba   :  { %v705_v17 = vadd.f32 %v704_v12, %v703_v10  ;;  %v718_v55 = vrot.slane %v717_v13, 1 }
 0x1bc   :  { %v706_v56 = vmul.f32 0.03125, %v705_v17  ;;  %v719_v57 = vadd.f32 %v718_v55, %v717_v13 }
 0x1be   :  { %v720_v20 = vmul.f32 0.03125, %v719_v57  ;;  %v721_v21 = vmul.f32 %v706_v56, %v706_v56 }
 0x1c0   :  { %v722_v22 = vsub.f32 %v720_v20, %v721_v21 }
 0x1c2   :  { %v723_v26 = vmax.f32 %v722_v22, 0.0 }
 0x1c4   :  { %v725_v27 = vadd.f32 1e-05, %v723_v26 }
 0x1c6   :  { %1476 = vrsqrt.f32 %v725_v27  ;;  %vm732_vm4 = vweird.f32 %v725_v27 }
 0x1cc   :  { %v1477_v35 = vpop.eup %1476 }
 0x1cd   :  { %v727_v36 = vmul.f32 %v1477_v35, %v725_v27  ;;  %vm733_vm3 = vweird.f32 %v1477_v35 }
 0x1ce   :  { %vm734_vm5 = vmor %vm732_vm4, %vm733_vm3 }
 0x1cf   :  { %v728_v37 = vmul.f32 %v1477_v35, %v727_v36 }
 0x1d1   :  { %v729_v38 = vmul.f32 0.5, %v728_v37 }
 0x1d3   :  { %v730_v42 = vsub.f32 1.5, %v729_v38 }
 0x1d5   :  { %v731_v44 = vmul.f32 %v1477_v35, %v730_v42 }
 0x1d7   :  { %v735_v45 = vsel %vm734_vm5, %v1477_v35, %v731_v44 }
 0x1d8   :  { %v736_v46 = vmul.f32 %v735_v45, %v724_v43 }
 0x1da   :  { %v738_v48 = vmul.f32 %v736_v46, %v706_v56  ;;  %v741_v49 = vperm.slane %v736_v46, 0 }
 0x1dc   :  { %v739_v50 = vsub.f32 %v737_v47, %v738_v48  ;;  %v743_v51 = vmul.f32 %v741_v49, %v1670_v40  ;;  %v744_v52 = vmul.f32 %v741_v49, %v1668_v39  ;;  %v745_v54 = vmul.f32 %v741_v49, %v1672_v41 }
 0x1dd   :  { %v746_v58 = vmul.f32 %v741_v49, %v1683_v53 }
 0x1de   :  { %v748_v59 = vperm.slane %v739_v50, 0 }
 0x1e0   :  { %v750_v60 = vadd.f32 %v748_v59, %v743_v51  ;;  %v751_v61 = vadd.f32 %v748_v59, %v744_v52  ;;  %v752_v62 = vadd.f32 %v748_v59, %v745_v54  ;;  %v753_v63 = vadd.f32 %v748_v59, %v746_v58 }
 0x1e2   :  { %v754_v0 = vmax.f32 %v750_v60, 0.0  ;;  %v755_v1 = vmax.f32 %v751_v61, 0.0  ;;  %v757_v2 = vmax.f32 %v753_v63, 0.0  ;;  %v756_v3 = vmax.f32 %v752_v62, 0.0 }
 0x1e4   :  { %761 = vst [vmem:[#allocation2 + $0x21] sm:$0xff] %v757_v2  ;;  %v775_v4 = vpack.c.bf16 %v755_v1, %v754_v0  ;;  %v778_v11 = vpack.c.bf16 %v757_v2, %v756_v3 }
 0x1e5   :  { %758 = vst [vmem:[#allocation2 + $0x1] sm:$0xff] %v754_v0 }
 0x1e6   :  { %759 = vst [vmem:[#allocation2 + $0x9] sm:$0xff] %v755_v1  ;;  %999 = vmatmul.bf16.vlgmr.msrb.gmra.mxu3 %v775_v4 }
 0x1e7   :  { %760 = vst [vmem:[#allocation2 + $0x19] sm:$0xff] %v756_v3 }
 0x1eb   :  { %v773_v40 = vld [vmem:[#allocation2 + $0x22] sm:$0xff] }
 0x1ec   :  { %v762_v39 = vld [vmem:[#allocation2] sm:$0xff] }
 0x1ed   :  { %v763_v41 = vld [vmem:[#allocation2 + $0x8] sm:$0xff] }
 0x1ee   :  { %v770_v6 = vld [vmem:[#allocation2 + $0x2] sm:$0xff]  ;;  %v771_v53 = vld [vmem:[#allocation2 + $0xa] sm:$0xff]  ;;  %v774_v7 = vpack.c.bf16 %v763_v41, %v762_v39  ;;  %v772_v9 = vld [vmem:[#allocation2 + $0x1a] sm:$0xff] }
 0x1ef   :  { %v776_v8 = vpack.c.bf16 %v771_v53, %v770_v6  ;;  %v779_v10 = vpack.c.bf16 %v773_v40, %v772_v9  ;;  %v764_v12 = vld [vmem:[#allocation2 + $0x18] sm:$0xff]  ;;  %v765_v13 = vld [vmem:[#allocation2 + $0x20] sm:$0xff] }
 0x1f0   :  { %980 = vmatmul.bf16.vlgmr.msrb.gmra.mxu2 %v774_v7  ;;  %v777_v14 = vpack.c.bf16 %v765_v13, %v764_v12  ;;  %v1056_v41 = vld [vmem:[%s1724_s8] sm:$0x1] }
 0x1f1   :  { %1018 = vmatmul.bf16.vlgmr.msra.gmra.mxu0 %v776_v8  ;;  %1023 = vmatmul.bf16.vlgmr.msra.gmra.mxu1 %v779_v10  ;;  %v1069_v8 = vld [vmem:[%s1725_s9] sm:$0x1] }
 0x1f6   :  { %1004 = vmatmul.bf16.gmra.mxu3 %v778_v11 }
 0x200   :  { %985 = vmatmul.bf16.gmra.mxu2 %v777_v14 }
 0x269   :  { %v1000_v15 = vpop.f32.mrf.mxu3 }
 0x26e   :  { %v1019_v55 = vpop.f32.mrf.mxu0  ;;  %v1024_v5 = vpop.f32.mrf.mxu1 }
 0x271   :  { %v1002_v17 = vpop.f32.mrf.mxu3 }
 0x273   :  { %v981_v16 = vpop.f32.mrf.mxu2 }
 0x274   :  { %v1001_v20 = vadd.f32 %v1000_v15, %v981_v16 }
 0x276   :  { %v1021_v22 = vpop.f32.mrf.mxu0  ;;  %v1020_v24 = vadd.f32 %v1019_v55, %v1001_v20  ;;  %v1026_v33 = vpop.f32.mrf.mxu1 }
 0x278   :  { %v1039_v29 = vmul.f32 %v1020_v24, %v1020_v24 }
 0x279   :  { %v1005_v57 = vpop.f32.mrf.mxu3 }
 0x27b   :  { %v983_v56 = vpop.f32.mrf.mxu2 }
 0x27c   :  { %v1003_v18 = vadd.f32 %v1002_v17, %v983_v56 }
 0x27e   :  { %v1022_v23 = vadd.f32 %v1021_v22, %v1003_v18 }
 0x280   :  { %v1040_v26 = vmul.f32 %v1022_v23, %v1022_v23  ;;  %v1029_v30 = vadd.f32 %v1022_v23, %v1020_v24 }
 0x281   :  { %v1007_v28 = vpop.f32.mrf.mxu3 }
 0x282   :  { %v1043_v34 = vadd.f32 %v1040_v26, %v1039_v29 }
 0x283   :  { %v986_v19 = vpop.f32.mrf.mxu2 }
 0x284   :  { %v1006_v21 = vadd.f32 %v1005_v57, %v986_v19 }
 0x286   :  { %v1025_v25 = vadd.f32 %v1024_v5, %v1006_v21 }
 0x288   :  { %v1041_v31 = vmul.f32 %v1025_v25, %v1025_v25  ;;  %v1030_v35 = vadd.f32 %v1029_v30, %v1025_v25 }
 0x28a   :  { %v1044_v37 = vadd.f32 %v1043_v34, %v1041_v31 }
 0x28b   :  { %v988_v27 = vpop.f32.mrf.mxu2 }
 0x28c   :  { %v1008_v32 = vadd.f32 %v1007_v28, %v988_v27 }
 0x28e   :  { %v1027_v36 = vadd.f32 %v1026_v33, %v1008_v32 }
 0x290   :  { %v1031_v38 = vadd.f32 %v1030_v35, %v1027_v36  ;;  %v1042_v42 = vmul.f32 %v1027_v36, %v1027_v36 }
 0x292   :  { %v1032_v43 = vrot.slane %v1031_v38, 4  ;;  %v1045_v44 = vadd.f32 %v1044_v37, %v1042_v42 }
 0x294   :  { %v1033_v45 = vadd.f32 %v1032_v43, %v1031_v38  ;;  %v1046_v46 = vrot.slane %v1045_v44, 4 }
 0x296   :  { %v1034_v47 = vrot.slane %v1033_v45, 2  ;;  %v1047_v48 = vadd.f32 %v1046_v46, %v1045_v44 }
 0x298   :  { %v1035_v49 = vadd.f32 %v1034_v47, %v1033_v45  ;;  %v1048_v50 = vrot.slane %v1047_v48, 2 }
 0x29a   :  { %v1036_v51 = vrot.slane %v1035_v49, 1  ;;  %v1049_v52 = vadd.f32 %v1048_v50, %v1047_v48 }
 0x29c   :  { %v1037_v54 = vadd.f32 %v1036_v51, %v1035_v49  ;;  %v1050_v58 = vrot.slane %v1049_v52, 1 }
 0x29e   :  { %v1038_v59 = vmul.f32 0.03125, %v1037_v54  ;;  %v1051_v60 = vadd.f32 %v1050_v58, %v1049_v52 }
 0x2a0   :  { %v1052_v61 = vmul.f32 0.03125, %v1051_v60  ;;  %v1053_v62 = vmul.f32 %v1038_v59, %v1038_v59 }
 0x2a2   :  { %v1054_v63 = vsub.f32 %v1052_v61, %v1053_v62 }
 0x2a4   :  { %v1055_v0 = vmax.f32 %v1054_v63, 0.0 }
 0x2a6   :  { %v1057_v1 = vadd.f32 1e-05, %v1055_v0 }
 0x2a8   :  { %1478 = vrsqrt.f32 %v1057_v1  ;;  %vm1064_vm7 = vweird.f32 %v1057_v1 }
 0x2ae   :  { %v1479_v2 = vpop.eup %1478 }
 0x2af   :  { %v1059_v3 = vmul.f32 %v1479_v2, %v1057_v1  ;;  %vm1065_vm6 = vweird.f32 %v1479_v2 }
 0x2b0   :  { %vm1066_vm8 = vmor %vm1064_vm7, %vm1065_vm6 }
 0x2b1   :  { %v1060_v4 = vmul.f32 %v1479_v2, %v1059_v3 }
 0x2b3   :  { %v1061_v39 = vmul.f32 0.5, %v1060_v4 }
 0x2b5   :  { %v1062_v40 = vsub.f32 1.5, %v1061_v39 }
 0x2b7   :  { %v1063_v6 = vmul.f32 %v1479_v2, %v1062_v40 }
 0x2b9   :  { %v1067_v53 = vsel %vm1066_vm8, %v1479_v2, %v1063_v6 }
 0x2ba   :  { %v1068_v7 = vmul.f32 %v1067_v53, %v1056_v41 }
 0x2bc   :  { %v1070_v9 = vmul.f32 %v1068_v7, %v1038_v59  ;;  %v1073_v10 = vperm.slane %v1068_v7, 0 }
 0x2be   :  { %v1071_v11 = vsub.f32 %v1069_v8, %v1070_v9  ;;  %v1075_v12 = vmul.f32 %v1073_v10, %v1020_v24  ;;  %v1076_v13 = vmul.f32 %v1073_v10, %v1022_v23  ;;  %v1077_v14 = vmul.f32 %v1073_v10, %v1025_v25 }
 0x2bf   :  { %v1078_v15 = vmul.f32 %v1073_v10, %v1027_v36 }
 0x2c0   :  { %v1080_v16 = vperm.slane %v1071_v11, 0 }
 0x2c2   :  { %v1082_v17 = vadd.f32 %v1080_v16, %v1075_v12  ;;  %v1083_v55 = vadd.f32 %v1080_v16, %v1076_v13  ;;  %v1084_v56 = vadd.f32 %v1080_v16, %v1077_v14  ;;  %v1085_v57 = vadd.f32 %v1080_v16, %v1078_v15 }
 0x2c4   :  { %v1086_v18 = vmax.f32 %v1082_v17, 0.0  ;;  %v1087_v5 = vmax.f32 %v1083_v55, 0.0  ;;  %v1088_v19 = vmax.f32 %v1084_v56, 0.0  ;;  %v1089_v20 = vmax.f32 %v1085_v57, 0.0 }
 0x2c6   :  { %1090 = vst [vmem:[%s1726_s10] sm:$0xff] %v1086_v18 }
 0x2c7   :  { %1091 = vst [vmem:[%s1726_s10 + $0x8] sm:$0xff] %v1087_v5 }
 0x2c8   :  { %1092 = vst [vmem:[%s1726_s10 + $0x10] sm:$0xff] %v1088_v19 }
 0x2c9   :  { %1093 = vst [vmem:[%s1726_s10 + $0x18] sm:$0xff] %v1089_v20 }
 0x2ca   :  { %1098 = vsyncpa [#allocation5], 1 }
 0x2cb   :  { %1099 = vsyncpa [#allocation7], 1 }

</bundles_post_ra>
